<compile_context>
chip_gen: v5e
topology: v5e:2x2
jax: 0.10.0
libtpu: 0.0.40
codegen_flags: <defaults>
</compile_context>

<pallas_src>
import functools

import jax
import jax.numpy as jnp
from jax.experimental import pallas as pl
from jax.experimental.pallas import tpu as pltpu

_LANE = 128
_LN10 = 2.302585092994046


# ----------------------------------------------------------------------------
# Controller (plain jnp, XLA-fused): controls -> physical per-batch scales.
# The MLP is orders of magnitude below MXU granularity; a dedicated pallas_call
# only adds launch + padded-tile overhead.
# ----------------------------------------------------------------------------
def run_controller(controls, weights):
    """controls: (B, num_controls) -> normalized params p in [0,1], shape (B, 3)."""
    w1, b1, w2, b2, w3, b3 = weights
    h = jnp.maximum(controls @ w1 + b1, 0.0)
    h = jnp.maximum(h @ w2 + b2, 0.0)
    return jax.nn.sigmoid(h @ w3 + b3)  # (B, 3)


def params_to_scales(p):
    """Map normalized params [0,1] to physical scales; returns two (B, 1) f32:
       s1 = drive * 10^(gain_in_dB/20)   (pre-tanh scale)
       g2 = 10^(gain_out_dB/20)          (post-tanh scale)"""
    g1_db = -24.0 + 48.0 * p[:, 0]
    drive = 1.0 + 9.0 * p[:, 1]
    g2_db = -24.0 + 48.0 * p[:, 2]
    g1 = jnp.exp(g1_db * (_LN10 / 20.0))
    g2 = jnp.exp(g2_db * (_LN10 / 20.0))
    s1 = (drive * g1).astype(jnp.float32).reshape(-1, 1)   # (B, 1)
    g2 = g2.astype(jnp.float32).reshape(-1, 1)             # (B, 1)
    return s1, g2


# ----------------------------------------------------------------------------
# Processor kernel: y = tanh(s1 * x) * g2, elementwise over time.
# ----------------------------------------------------------------------------
def processor_kernel(s1_ref, g2_ref, x_ref, y_ref):
    # s1_ref/g2_ref: (B, 1) VMEM, broadcast along lanes; x_ref/y_ref: (B, chunk) VMEM.
    # jnp.tanh -> single EUP op (separate bundle slot); kernel is HBM-bound.
    y_ref[...] = (jnp.tanh(x_ref[...] * s1_ref[...]) * g2_ref[...]).astype(y_ref.dtype)


def run_processor(x2d, s1, g2, *, target_block_bytes=2 * 1024 * 1024):
    """x2d: (B, T) f32; s1, g2: (B, 1) f32 per-batch scales.

    The whole batch lives in every block; the grid iterates only over time
    chunks of ~target_block_bytes.  The final chunk may be partial — Pallas
    masks it (no jnp.pad / output slice needed)."""
    assert x2d.dtype == jnp.float32, "grey-box processor kernel is f32-only"
    B, T = x2d.shape

    # chunk: multiple of 128 lanes, ~target_block_bytes of f32 per block.
    chunk = max(_LANE, (target_block_bytes // (B * 4) // _LANE) * _LANE)
    if chunk >= T:
        chunk = T            # full-extent block (legal even if T % 128 != 0)
        n_chunks = 1
    else:
        n_chunks = -(-T // chunk)   # ceil div; last block partial -> masked

    return pl.pallas_call(
        processor_kernel,
        out_shape=jax.ShapeDtypeStruct((B, T), x2d.dtype),
        grid=(n_chunks,),
        in_specs=[
            pl.BlockSpec((B, 1), lambda t: (0, 0)),       # s1 (per-batch scale)
            pl.BlockSpec((B, 1), lambda t: (0, 0)),       # g2 (per-batch scale)
            pl.BlockSpec((B, chunk), lambda t: (0, t)),   # audio chunk
        ],
        out_specs=pl.BlockSpec((B, chunk), lambda t: (0, t)),
        compiler_params=pltpu.CompilerParams(
            dimension_semantics=("parallel",)),           # v7x: both TCs stream chunks
        cost_estimate=pl.CostEstimate(
            flops=2 * B * T, transcendentals=B * T, bytes_accessed=8 * B * T),
    )(s1, g2, x2d)


# ----------------------------------------------------------------------------
# GreyBoxModel forward
# ----------------------------------------------------------------------------
def init_grey_box_params(key, num_controls=2, hidden=16, num_block_params=3):
    k1, k2, k3 = jax.random.split(key, 3)
    w1 = jax.random.normal(k1, (num_controls, hidden), jnp.float32) * 0.5
    b1 = jnp.zeros((hidden,), jnp.float32)
    w2 = jax.random.normal(k2, (hidden, hidden), jnp.float32) * 0.3
    b2 = jnp.zeros((hidden,), jnp.float32)
    w3 = jax.random.normal(k3, (hidden, num_block_params), jnp.float32) * 0.3
    b3 = jnp.zeros((num_block_params,), jnp.float32)
    return (w1, b1, w2, b2, w3, b3)


@functools.partial(jax.jit, static_argnames=("target_block_bytes",))
def grey_box_forward(x, controls, weights, *, target_block_bytes=2 * 1024 * 1024):
    """x: (B, 1, T) float32, controls: (B, num_controls) float32."""
    B, C, T = x.shape
    assert C == 1, "grey-box audio model expects mono channel (B, 1, T)"
    p = run_controller(controls, weights)                 # (B, 3) in [0, 1]
    s1, g2 = params_to_scales(p)                          # (B, 1), (B, 1)
    y2d = run_processor(x[:, 0, :], s1, g2, target_block_bytes=target_block_bytes)
    return y2d[:, None, :]                                # (B, 1, T)


if __name__ == "__main__":
    key = jax.random.PRNGKey(0)
    kx, kc, kw = jax.random.split(key, 3)

    B, T, num_controls = 2, 12000, 2          # T not a multiple of 128 -> exercises masking
    x = jax.random.normal(kx, (B, 1, T), jnp.float32)
    controls = jax.random.uniform(kc, (B, num_controls), jnp.float32)
    weights = init_grey_box_params(kw, num_controls=num_controls,
                                   hidden=16, num_block_params=3)

    # Default path: whole (B, T) fits in a single ~2 MiB block (1 grid step).
    y = grey_box_forward(x, controls, weights)
    jax.block_until_ready(y)
    assert y.shape == x.shape and y.dtype == x.dtype

    # Multi-chunk path with a partial final block (exercises in-kernel tail masking).
    y_chunked = grey_box_forward(x, controls, weights, target_block_bytes=16 * 1024)
    jax.block_until_ready(y_chunked)

    # Reference check against pure-jnp forward.
    p_ref = run_controller(controls, weights)
    s1_ref, g2_ref = params_to_scales(p_ref)
    y_ref = jnp.tanh(x[:, 0, :] * s1_ref) * g2_ref
    assert jnp.allclose(y[:, 0, :], y_ref, rtol=1e-5, atol=1e-5)
    assert jnp.allclose(y_chunked[:, 0, :], y_ref, rtol=1e-5, atol=1e-5)

    print("KERNEL_OK")
</pallas_src>

<mosaic_0001>
module attributes {stable_mosaic.version = 11 : i64} {
  func.func @processor_kernel(%arg0: i32, %arg1: memref<2x1xf32, #tpu.memory_space<vmem>>, %arg2: memref<2x1xf32, #tpu.memory_space<vmem>>, %arg3: memref<2x12000xf32, #tpu.memory_space<vmem>>, %arg4: memref<2x12000xf32, #tpu.memory_space<vmem>>) attributes {dimension_semantics = [#tpu.dimension_semantics<parallel>], iteration_bounds = array<i64: 1>, scalar_prefetch = 0 : i64, scratch_operands = 0 : i64, tpu.core_type = #tpu.core_type<tc>, window_params = [{pipeline_mode = #tpu.pipeline_mode<synchronous>, transform_indices = @transform_0, window_bounds = array<i64: 2, 1>}, {pipeline_mode = #tpu.pipeline_mode<synchronous>, transform_indices = @transform_1, window_bounds = array<i64: 2, 1>}, {transform_indices = @transform_2, window_bounds = array<i64: 2, 12000>}, {transform_indices = @transform_3, window_bounds = array<i64: 2, 12000>}]} {
    %c0 = arith.constant 0 : index
    %c0_0 = arith.constant 0 : index
    %0 = vector.load %arg3[%c0, %c0_0] : memref<2x12000xf32, #tpu.memory_space<vmem>>, vector<2x12000xf32>
    %c0_1 = arith.constant 0 : index
    %c0_2 = arith.constant 0 : index
    %1 = vector.load %arg1[%c0_1, %c0_2] : memref<2x1xf32, #tpu.memory_space<vmem>>, vector<2x1xf32>
    %2 = vector.broadcast %1 : vector<2x1xf32> to vector<2x12000xf32>
    %3 = arith.mulf %0, %2 : vector<2x12000xf32>
    %4 = math.tanh %3 : vector<2x12000xf32>
    %c0_3 = arith.constant 0 : index
    %c0_4 = arith.constant 0 : index
    %5 = vector.load %arg2[%c0_3, %c0_4] : memref<2x1xf32, #tpu.memory_space<vmem>>, vector<2x1xf32>
    %6 = vector.broadcast %5 : vector<2x1xf32> to vector<2x12000xf32>
    %7 = arith.mulf %4, %6 : vector<2x12000xf32>
    %c0_5 = arith.constant 0 : index
    %c0_6 = arith.constant 0 : index
    %8 = vector.load %arg4[%c0_5, %c0_6] : memref<2x12000xf32, #tpu.memory_space<vmem>>, vector<2x12000xf32>
    tpu.vector_store %arg4[%c0_5, %c0_6], %7 {strides = array<i32>} : memref<2x12000xf32, #tpu.memory_space<vmem>>, vector<2x12000xf32>,
    return
  }
  func.func @transform_0(%arg0: i32) -> (i32, i32) {
    %c0_i32 = arith.constant 0 : i32
    %c0_i32_0 = arith.constant 0 : i32
    %c0_i32_1 = arith.constant 0 : i32
    return %c0_i32, %c0_i32_0 : i32, i32
  }
  func.func @transform_1(%arg0: i32) -> (i32, i32) {
    %c0_i32 = arith.constant 0 : i32
    %c0_i32_0 = arith.constant 0 : i32
    %c0_i32_1 = arith.constant 0 : i32
    return %c0_i32, %c0_i32_0 : i32, i32
  }
  func.func @transform_2(%arg0: i32) -> (i32, i32) {
    %c0_i32 = arith.constant 0 : i32
    %c0_i32_0 = arith.constant 0 : i32
    return %c0_i32, %arg0 : i32, i32
  }
  func.func @transform_3(%arg0: i32) -> (i32, i32) {
    %c0_i32 = arith.constant 0 : i32
    %c0_i32_0 = arith.constant 0 : i32
    return %c0_i32, %arg0 : i32, i32
  }
}

</mosaic_0001>

<bundles_post_ra>
// kernel: grey_box_forward.1
= control target key start
LH: loop header
LB: loop body
LE: loop exit
PB: predicated region body
PF: predicated region fallthrough
CT: control target
= control target key end

     0   :  { %v212_v0 = vmov 0   ;;  %v213_v3 = vmov 269488144   ;;  %vm153_vm0 = vcmask 1041408   ;;  %vm154_vm1 = vcmask 781314   ;;  %s436_s0 = inlined_call_operand.vmem [shape: f32[2,1], index: 0, kind: input, shape index: {}]   ;;  %s437_s1 = inlined_call_operand.vmem [shape: f32[2,1], index: 1, kind: input, shape index: {}]   ;;  %s438_s2 = inlined_call_operand.vmem [shape: f32[2,12000], index: 2, kind: input, shape index: {}]   ;;  %s439_s3 = inlined_call_operand.vmem [shape: f32[2,12000], index: 3, kind: output, shape index: {}]  }
   0x1   :  { %163 = vset.pattern.permute.xlu0 %v212_v0  ;;  %v38_v1 = vld [vmem:[%s436_s0] sm:$0x3]  ;;  %v44_v4 = vunpack.c.l.s4 %v213_v3  ;;  %v15_v9 = vld [vmem:[%s438_s2 + $0x8] sm:$0xff]  ;;  %v16_v10 = vld [vmem:[%s438_s2 + $0x10] sm:$0xff] }
   0x2   :  { %41 = vperm.xlu0 %163, %v38_v1   ;;  %v96_v2 = vld [vmem:[%s437_s1] sm:$0x3]  ;;  %v17_v11 = vld [vmem:[%s438_s2 + $0x18] sm:$0xff]  ;;  %v19_v15 = vld [vmem:[%s438_s2 + $0x28] sm:$0xff] }
   0x3   :  { %v45_v5 = vunpack.c.0.s8 %v44_v4  ;;  %v14_v8 = vld [vmem:[%s438_s2] sm:$0xff]  ;;  %v20_v17 = vld [vmem:[%s438_s2 + $0x30] sm:$0xff]  ;;  %v21_v19 = vld [vmem:[%s438_s2 + $0x38] sm:$0xff] }
   0x4   :  { %v18_v13 = vld [vmem:[%s438_s2 + $0x20] sm:$0xff]  ;;  %v23_v24 = vld [vmem:[%s438_s2 + $0x48] sm:$0xff]  ;;  %v24_v26 = vld [vmem:[%s438_s2 + $0x50] sm:$0xff] }
   0x5   :  { %v22_v22 = vld [vmem:[%s438_s2 + $0x40] sm:$0xff]  ;;  %v25_v29 = vld [vmem:[%s438_s2 + $0x58] sm:$0xff]  ;;  %v27_v34 = vld [vmem:[%s438_s2 + $0x68] sm:$0xff] }
   0x6   :  { %v26_v31 = vld [vmem:[%s438_s2 + $0x60] sm:$0xff]  ;;  %v28_v37 = vld [vmem:[%s438_s2 + $0x70] sm:$0xff]  ;;  %v29_v41 = vld [vmem:[%s438_s2 + $0x78] sm:$0xff] }
   0x7   :  { %v30_v45 = vld [vmem:[%s438_s2 + $0x80] sm:$0xff]  ;;  %v31_v49 = vld [vmem:[%s438_s2 + $0x88] sm:$0xff]  ;;  %v32_v53 = vld [vmem:[%s438_s2 + $0x90] sm:$0xff] }
   0x8   :  { %v33_v57 = vld [vmem:[%s438_s2 + $0x98] sm:$0xff]  ;;  %v34_v61 = vld [vmem:[%s438_s2 + $0xa0] sm:$0xff]  ;;  %v35_v1 = vld [vmem:[%s438_s2 + $0xa8] sm:$0xff] }
   0x9   :  { %vm155_vm2 = vmor %vm154_vm1, %vm153_vm0 }
   0xa   :  { %99 = vperm.xlu0 %163, %v96_v2  }
  0x74   :  { %v42_v6 = vpop.permute.xlu0 %41 }
  0x75   :  { %v240_v7 = vperm.slane %v42_v6, %v45_v5 }
  0x77   :  { %v48_v12 = vmul.f32 %v240_v7, %v14_v8  ;;  %v49_v14 = vmul.f32 %v240_v7, %v15_v9  ;;  %v50_v16 = vmul.f32 %v240_v7, %v16_v10  ;;  %v51_v18 = vmul.f32 %v240_v7, %v17_v11  ;;  %v37_v10 = vld [vmem:[%s438_s2 + $0xb8] sm:$0xf] }
  0x78   :  { %v52_v20 = vmul.f32 %v240_v7, %v18_v13  ;;  %v53_v23 = vmul.f32 %v240_v7, %v19_v15  ;;  %v54_v25 = vmul.f32 %v240_v7, %v20_v17  ;;  %v55_v27 = vmul.f32 %v240_v7, %v21_v19 }
  0x79   :  { %164 = vtanh.f32 %v48_v12  ;;  %v56_v30 = vmul.f32 %v240_v7, %v22_v22  ;;  %v57_v32 = vmul.f32 %v240_v7, %v23_v24  ;;  %v58_v35 = vmul.f32 %v240_v7, %v24_v26 }
  0x7a   :  { %166 = vtanh.f32 %v49_v14  ;;  %v59_v38 = vmul.f32 %v240_v7, %v25_v29  ;;  %v60_v42 = vmul.f32 %v240_v7, %v26_v31  ;;  %v61_v46 = vmul.f32 %v240_v7, %v27_v34 }
  0x7b   :  { %168 = vtanh.f32 %v50_v16  ;;  %v62_v50 = vmul.f32 %v240_v7, %v28_v37  ;;  %v63_v54 = vmul.f32 %v240_v7, %v29_v41  ;;  %v64_v58 = vmul.f32 %v240_v7, %v30_v45 }
  0x7c   :  { %v100_v21 = vpop.permute.xlu0 %99  ;;  %170 = vtanh.f32 %v51_v18  ;;  %v65_v62 = vmul.f32 %v240_v7, %v31_v49  ;;  %v66_v2 = vmul.f32 %v240_v7, %v32_v53  ;;  %v67_v6 = vmul.f32 %v240_v7, %v33_v57 }
  0x7d   :  { %v283_v28 = vperm.slane %v100_v21, %v45_v5  ;;  %172 = vtanh.f32 %v52_v20  ;;  %v36_v5 = vld [vmem:[%s438_s2 + $0xb0] sm:$0xff]  ;;  %v68_v11 = vmul.f32 %v240_v7, %v34_v61  ;;  %v69_v14 = vmul.f32 %v240_v7, %v35_v1 }
  0x7e   :  { %174 = vtanh.f32 %v53_v23  ;;  %v70_v17 = vmul.f32 %v240_v7, %v36_v5  ;;  %v71_v20 = vmul.f32 %v240_v7, %v37_v10 }
  0x7f   :  { %v165_v33 = vpop.eup %164  ;;  %176 = vtanh.f32 %v54_v25 }
  0x80   :  { %v167_v36 = vpop.eup %166  ;;  %178 = vtanh.f32 %v55_v27  ;;  %v106_v39 = vmul.f32 %v165_v33, %v283_v28 }
  0x81   :  { %v169_v40 = vpop.eup %168  ;;  %180 = vtanh.f32 %v56_v30  ;;  %v107_v43 = vmul.f32 %v167_v36, %v283_v28 }
  0x82   :  { %v171_v44 = vpop.eup %170  ;;  %182 = vtanh.f32 %v57_v32  ;;  %v108_v47 = vmul.f32 %v169_v40, %v283_v28  ;;  %130 = vst [vmem:[%s439_s3] sm:$0xff] %v106_v39 }
  0x83   :  { %v173_v48 = vpop.eup %172  ;;  %184 = vtanh.f32 %v58_v35  ;;  %v109_v51 = vmul.f32 %v171_v44, %v283_v28  ;;  %131 = vst [vmem:[%s439_s3 + $0x8] sm:$0xff] %v107_v43 }
  0x84   :  { %v175_v52 = vpop.eup %174  ;;  %186 = vtanh.f32 %v59_v38  ;;  %v110_v55 = vmul.f32 %v173_v48, %v283_v28  ;;  %132 = vst [vmem:[%s439_s3 + $0x10] sm:$0xff] %v108_v47 }
  0x85   :  { %v177_v56 = vpop.eup %176  ;;  %188 = vtanh.f32 %v60_v42  ;;  %v111_v59 = vmul.f32 %v175_v52, %v283_v28  ;;  %133 = vst [vmem:[%s439_s3 + $0x18] sm:$0xff] %v109_v51 }
  0x86   :  { %v179_v60 = vpop.eup %178  ;;  %190 = vtanh.f32 %v61_v46  ;;  %v112_v63 = vmul.f32 %v177_v56, %v283_v28  ;;  %134 = vst [vmem:[%s439_s3 + $0x20] sm:$0xff] %v110_v55 }
  0x87   :  { %v181_v0 = vpop.eup %180  ;;  %192 = vtanh.f32 %v62_v50  ;;  %v113_v3 = vmul.f32 %v179_v60, %v283_v28  ;;  %135 = vst [vmem:[%s439_s3 + $0x28] sm:$0xff] %v111_v59 }
  0x88   :  { %v183_v4 = vpop.eup %182  ;;  %194 = vtanh.f32 %v63_v54  ;;  %v114_v8 = vmul.f32 %v181_v0, %v283_v28  ;;  %136 = vst [vmem:[%s439_s3 + $0x30] sm:$0xff] %v112_v63 }
  0x89   :  { %v185_v9 = vpop.eup %184  ;;  %196 = vtanh.f32 %v64_v58  ;;  %v115_v12 = vmul.f32 %v183_v4, %v283_v28  ;;  %137 = vst [vmem:[%s439_s3 + $0x38] sm:$0xff] %v113_v3 }
  0x8a   :  { %v187_v13 = vpop.eup %186  ;;  %198 = vtanh.f32 %v65_v62  ;;  %v116_v15 = vmul.f32 %v185_v9, %v283_v28  ;;  %138 = vst [vmem:[%s439_s3 + $0x40] sm:$0xff] %v114_v8 }
  0x8b   :  { %v189_v16 = vpop.eup %188  ;;  %200 = vtanh.f32 %v66_v2  ;;  %v117_v18 = vmul.f32 %v187_v13, %v283_v28  ;;  %139 = vst [vmem:[%s439_s3 + $0x48] sm:$0xff] %v115_v12 }
  0x8c   :  { %v191_v19 = vpop.eup %190  ;;  %202 = vtanh.f32 %v67_v6  ;;  %v118_v21 = vmul.f32 %v189_v16, %v283_v28  ;;  %140 = vst [vmem:[%s439_s3 + $0x50] sm:$0xff] %v116_v15 }
  0x8d   :  { %v193_v22 = vpop.eup %192  ;;  %204 = vtanh.f32 %v68_v11  ;;  %v119_v23 = vmul.f32 %v191_v19, %v283_v28  ;;  %141 = vst [vmem:[%s439_s3 + $0x58] sm:$0xff] %v117_v18 }
  0x8e   :  { %v195_v24 = vpop.eup %194  ;;  %206 = vtanh.f32 %v69_v14  ;;  %v120_v25 = vmul.f32 %v193_v22, %v283_v28  ;;  %142 = vst [vmem:[%s439_s3 + $0x60] sm:$0xff] %v118_v21 }
  0x8f   :  { %v197_v7 = vpop.eup %196  ;;  %208 = vtanh.f32 %v70_v17  ;;  %v121_v26 = vmul.f32 %v195_v24, %v283_v28  ;;  %143 = vst [vmem:[%s439_s3 + $0x68] sm:$0xff] %v119_v23 }
  0x90   :  { %v199_v27 = vpop.eup %198  ;;  %210 = vtanh.f32 %v71_v20  ;;  %v122_v29 = vmul.f32 %v197_v7, %v283_v28  ;;  %144 = vst [vmem:[%s439_s3 + $0x70] sm:$0xff] %v120_v25 }
  0x91   :  { %v201_v30 = vpop.eup %200  ;;  %v123_v31 = vmul.f32 %v199_v27, %v283_v28  ;;  %145 = vst [vmem:[%s439_s3 + $0x78] sm:$0xff] %v121_v26 }
  0x92   :  { %v203_v32 = vpop.eup %202  ;;  %v124_v33 = vmul.f32 %v201_v30, %v283_v28  ;;  %146 = vst [vmem:[%s439_s3 + $0x80] sm:$0xff] %v122_v29 }
  0x93   :  { %v205_v34 = vpop.eup %204  ;;  %v125_v35 = vmul.f32 %v203_v32, %v283_v28  ;;  %147 = vst [vmem:[%s439_s3 + $0x88] sm:$0xff] %v123_v31 }
  0x94   :  { %v207_v36 = vpop.eup %206  ;;  %v126_v37 = vmul.f32 %v205_v34, %v283_v28  ;;  %148 = vst [vmem:[%s439_s3 + $0x90] sm:$0xff] %v124_v33 }
  0x95   :  { %v209_v38 = vpop.eup %208  ;;  %v127_v39 = vmul.f32 %v207_v36, %v283_v28  ;;  %149 = vst [vmem:[%s439_s3 + $0x98] sm:$0xff] %v125_v35 }
  0x96   :  { %v211_v40 = vpop.eup %210  ;;  %v128_v41 = vmul.f32 %v209_v38, %v283_v28  ;;  %150 = vst [vmem:[%s439_s3 + $0xa0] sm:$0xff] %v126_v37 }
  0x97   :  { %v129_v42 = vmul.f32 %v211_v40, %v283_v28  ;;  %151 = vst [vmem:[%s439_s3 + $0xa8] sm:$0xff] %v127_v39 }
  0x98   :  { %152 = vst [vmem:[%s439_s3 + $0xb0] sm:$0xff] %v128_v41 }
  0x99   :  { %156 = vst.msk [vmem:[%s439_s3 + $0xb8] sm:$0xf] %vm155_vm2, %v129_v42 }

</bundles_post_ra>
